<compile_context>
chip_gen: v6e
topology: v6e:2x2x1
jax: 0.10.0
libtpu: 0.0.40
codegen_flags: <defaults>
</compile_context>

<pallas_src>
import jax
import jax.numpy as jnp
from jax.experimental import pallas as pl
from jax.experimental.pallas import tpu as pltpu


def _round_up(n, m):
    return ((n + m - 1) // m) * m


def _make_kernel(E, E_rows, E_pad, C_pad, eps=1e-5):
    """Kernel factory: single block, whole (B, E) problem resident in VMEM.

    Param slab layout (rows x 128+ lanes, all f32):
      row 0             : folded mlp3 bias  (cols [:E] real, rest 0)
      row 1             : final bias        (cols [:C] real, rest 0)
      rows 2..7         : zero padding (8-sublane alignment)
      rows 8 .. 8+E     : folded mlp3 weight (E, E) in cols [:E], rest 0
      rows 8+E_rows ..  : final weight (E, C) in cols [:C], rest 0
    """
    r_w3 = 8
    r_w = 8 + E_rows

    def kernel(x_ref, p_ref, out_ref):
        x = x_ref[...].astype(jnp.float32)                              # (B, E)

        # --- BatchNorm1d (training mode: biased batch variance) ---
        # gamma/beta are folded into the mlp3 weight/bias offline, so only the
        # normalization remains: one XLU reduction pair + EUP rsqrt.
        mean = jnp.mean(x, axis=0, keepdims=True)                       # (1, E)
        diff = x - mean
        var = jnp.mean(diff * diff, axis=0, keepdims=True)              # (1, E)
        xn = diff * jax.lax.rsqrt(var + eps)                            # (B, E)

        b3 = p_ref[0:1, :E_pad]                                         # (1, E_pad)
        b = p_ref[1:2, :C_pad]                                          # (1, C_pad)
        w3 = p_ref[r_w3:r_w3 + E, :E_pad]                               # (E, E_pad)
        w = p_ref[r_w:r_w + E_pad, :C_pad]                              # (E_pad, C_pad)

        # --- mlp3 + ReLU (lane-dense: padded cols are 0 -> relu(0) = 0) ---
        h = jnp.dot(xn, w3, preferred_element_type=jnp.float32) + b3
        h = jnp.maximum(h, 0.0)                                         # (B, E_pad)

        # --- final projection: padded h cols hit zero rows of w ---
        logits = jnp.dot(h, w, preferred_element_type=jnp.float32) + b
        out_ref[...] = logits.astype(out_ref.dtype)                     # (B, C_pad)

    return kernel


class ClassificationHeadTPU:
    """Packs the parameters once; per-call path is one jitted pallas_call."""

    def __init__(self, gamma, beta, w3, b3, w, b):
        w3 = jnp.asarray(w3, jnp.float32)  # (E, E), pre-transposed (in, out)
        w = jnp.asarray(w, jnp.float32)    # (E, C), pre-transposed (in, out)
        E = w3.shape[0]
        C = w.shape[1]
        gamma = jnp.asarray(gamma, jnp.float32).reshape(E)
        beta = jnp.asarray(beta, jnp.float32).reshape(E)
        b3 = jnp.asarray(b3, jnp.float32).reshape(E)
        b = jnp.asarray(b, jnp.float32).reshape(C)

        E_pad = _round_up(max(E, 128), 128)   # lane-dense hidden width
        C_pad = _round_up(max(C, 128), 128)   # lane-dense output width
        W = max(E_pad, C_pad)
        E_rows = _round_up(E, 8)
        R = 8 + E_rows + E_pad                # total slab rows (8-aligned)

        # Fold BN affine into mlp3 (elementwise affine precedes the matmul):
        #   (z*gamma + beta) @ w3 + b3 == z @ (gamma[:,None]*w3) + (beta@w3 + b3)
        w3_eff = w3 * gamma[:, None]
        b3_eff = beta @ w3 + b3

        slab = jnp.zeros((R, W), jnp.float32)
        slab = slab.at[0, :E].set(b3_eff)
        slab = slab.at[1, :C].set(b)
        slab = slab.at[8:8 + E, :E].set(w3_eff)
        slab = slab.at[8 + E_rows:8 + E_rows + E, :C].set(w)
        self.params = jax.block_until_ready(slab)   # packed once, off hot path

        self.E, self.C, self.C_pad = E, C, C_pad
        kernel = _make_kernel(E, E_rows, E_pad, C_pad)

        def forward(x, params):
            B = x.shape[0]
            out_padded = pl.pallas_call(
                kernel,
                out_shape=jax.ShapeDtypeStruct((B, C_pad), jnp.float32),
                in_specs=[
                    pl.BlockSpec(memory_space=pltpu.MemorySpace.VMEM),  # x
                    pl.BlockSpec(memory_space=pltpu.MemorySpace.VMEM),  # param slab
                ],
                out_specs=pl.BlockSpec(memory_space=pltpu.MemorySpace.VMEM),
                compiler_params=pltpu.CompilerParams(
                    vmem_limit_bytes=32 * 1024 * 1024),
            )(x, params)
            # Trailing slice stays under the same jit so XLA fuses it.
            return out_padded[:, :C]

        self._forward = jax.jit(forward)

    def __call__(self, x):
        return self._forward(x, self.params)


if __name__ == "__main__":
    batch = 8
    embed_size = 32
    class_size = 4

    key = jax.random.PRNGKey(0)
    kx, k3w, k3b, kw, kb, kg, kbt = jax.random.split(key, 7)

    # Input hidden_state: (batch, embed_size)
    x = jax.random.normal(kx, (batch, embed_size), dtype=jnp.float32)

    # BatchNorm1d affine params (non-trivial values to exercise the fold).
    gamma = 1.0 + 0.1 * jax.random.normal(kg, (embed_size,), dtype=jnp.float32)
    beta = 0.1 * jax.random.normal(kbt, (embed_size,), dtype=jnp.float32)

    # Linear layers, deterministic synthetic init (torch-style uniform bound),
    # stored pre-transposed as (in_features, out_features).
    bound = 1.0 / (embed_size ** 0.5)
    w3 = jax.random.uniform(k3w, (embed_size, embed_size),
                            minval=-bound, maxval=bound, dtype=jnp.float32)
    b3 = jax.random.uniform(k3b, (embed_size,),
                            minval=-bound, maxval=bound, dtype=jnp.float32)
    w = jax.random.uniform(kw, (embed_size, class_size),
                           minval=-bound, maxval=bound, dtype=jnp.float32)
    b = jax.random.uniform(kb, (class_size,),
                           minval=-bound, maxval=bound, dtype=jnp.float32)

    head = ClassificationHeadTPU(gamma, beta, w3, b3, w, b)
    logits = head(x)
    jax.block_until_ready(logits)

    # Pure-JAX reference: exact original forward math (no folding/padding).
    mean = jnp.mean(x, axis=0, keepdims=True)
    var = jnp.mean((x - mean) ** 2, axis=0, keepdims=True)
    xn = (x - mean) / jnp.sqrt(var + 1e-5) * gamma[None, :] + beta[None, :]
    ref = jnp.maximum(xn @ w3 + b3[None, :], 0.0) @ w + b[None, :]

    assert logits.shape == (batch, class_size)
    assert jnp.allclose(logits, ref, atol=1e-4, rtol=1e-4)

    print("KERNEL_OK")
</pallas_src>

<mosaic_0001>
module attributes {stable_mosaic.version = 11 : i64} {
  func.func @kernel(%arg0: memref<8x32xf32, #tpu.memory_space<vmem>>, %arg1: memref<168x128xf32, #tpu.memory_space<vmem>>, %arg2: memref<8x128xf32, #tpu.memory_space<vmem>>) attributes {dimension_semantics = [], scalar_prefetch = 0 : i64, scratch_operands = 0 : i64, tpu.core_type = #tpu.core_type<tc>} {
    %c0 = arith.constant 0 : index
    %c0_0 = arith.constant 0 : index
    %0 = vector.load %arg0[%c0, %c0_0] : memref<8x32xf32, #tpu.memory_space<vmem>>, vector<8x32xf32>
    %cst = arith.constant dense<0.000000e+00> : vector<32xf32>
    %1 = vector.multi_reduction <add>, %0, %cst [0] : vector<8x32xf32> to vector<32xf32>
    %2 = vector.shape_cast %1 : vector<32xf32> to vector<1x32xf32>
    %cst_1 = arith.constant 8.000000e+00 : f32
    %3 = vector.broadcast %cst_1 : f32 to vector<1x32xf32>
    %4 = arith.divf %2, %3 : vector<1x32xf32>
    %5 = vector.broadcast %4 : vector<1x32xf32> to vector<8x32xf32>
    %6 = arith.subf %0, %5 : vector<8x32xf32>
    %7 = arith.mulf %6, %6 : vector<8x32xf32>
    %cst_2 = arith.constant dense<0.000000e+00> : vector<32xf32>
    %8 = vector.multi_reduction <add>, %7, %cst_2 [0] : vector<8x32xf32> to vector<32xf32>
    %9 = vector.shape_cast %8 : vector<32xf32> to vector<1x32xf32>
    %cst_3 = arith.constant 8.000000e+00 : f32
    %10 = vector.broadcast %cst_3 : f32 to vector<1x32xf32>
    %11 = arith.divf %9, %10 : vector<1x32xf32>
    %cst_4 = arith.constant 9.99999974E-6 : f32
    %12 = vector.broadcast %cst_4 : f32 to vector<1x32xf32>
    %13 = arith.addf %11, %12 : vector<1x32xf32>
    %14 = math.rsqrt %13 : vector<1x32xf32>
    %15 = vector.broadcast %14 : vector<1x32xf32> to vector<8x32xf32>
    %16 = arith.mulf %6, %15 : vector<8x32xf32>
    %c0_5 = arith.constant 0 : index
    %c0_6 = arith.constant 0 : index
    %17 = vector.load %arg1[%c0_5, %c0_6] : memref<168x128xf32, #tpu.memory_space<vmem>>, vector<1x128xf32>
    %c1 = arith.constant 1 : index
    %c0_7 = arith.constant 0 : index
    %18 = vector.load %arg1[%c1, %c0_7] : memref<168x128xf32, #tpu.memory_space<vmem>>, vector<1x128xf32>
    %c8 = arith.constant 8 : index
    %c0_8 = arith.constant 0 : index
    %19 = vector.load %arg1[%c8, %c0_8] : memref<168x128xf32, #tpu.memory_space<vmem>>, vector<32x128xf32>
    %c40 = arith.constant 40 : index
    %c0_9 = arith.constant 0 : index
    %20 = vector.load %arg1[%c40, %c0_9] : memref<168x128xf32, #tpu.memory_space<vmem>>, vector<128x128xf32>
    %cst_10 = arith.constant dense<0.000000e+00> : vector<8x128xf32>
    %21 = tpu.matmul %16, %19, %cst_10 {dimension_numbers = #tpu.dot_dimension_numbers<[1], [0], [0], [1], [0, 0, 1, 1], [], []>} : vector<8x32xf32>, vector<32x128xf32>, vector<8x128xf32> -> vector<8x128xf32>
    %22 = vector.broadcast %17 : vector<1x128xf32> to vector<8x128xf32>
    %23 = arith.addf %21, %22 : vector<8x128xf32>
    %cst_11 = arith.constant 0.000000e+00 : f32
    %24 = vector.broadcast %cst_11 : f32 to vector<8x128xf32>
    %25 = arith.maximumf %23, %24 : vector<8x128xf32>
    %cst_12 = arith.constant dense<0.000000e+00> : vector<8x128xf32>
    %26 = tpu.matmul %25, %20, %cst_12 {dimension_numbers = #tpu.dot_dimension_numbers<[1], [0], [0], [1], [0, 0, 1, 1], [], []>} : vector<8x128xf32>, vector<128x128xf32>, vector<8x128xf32> -> vector<8x128xf32>
    %27 = vector.broadcast %18 : vector<1x128xf32> to vector<8x128xf32>
    %28 = arith.addf %26, %27 : vector<8x128xf32>
    %c0_13 = arith.constant 0 : index
    %c0_14 = arith.constant 0 : index
    %29 = vector.load %arg2[%c0_13, %c0_14] : memref<8x128xf32, #tpu.memory_space<vmem>>, vector<8x128xf32>
    tpu.vector_store %arg2[%c0_13, %c0_14], %28 {strides = array<i32>} : memref<8x128xf32, #tpu.memory_space<vmem>>, vector<8x128xf32>,
    return
  }
}

</mosaic_0001>

<bundles_post_ra>
// kernel: forward.1
= control target key start
LH: loop header
LB: loop body
LE: loop exit
PB: predicated region body
PF: predicated region fallthrough
CT: control target
= control target key end

     0   :  { %7 = vsyncpa [#allocation3], 0  ;;  %s420_s0 = inlined_call_operand.hbm [shape: f32[8,32], index: 0, kind: input, shape index: {}]   ;;  %s421_s1 = inlined_call_operand.hbm [shape: f32[168,128], index: 1, kind: input, shape index: {}]   ;;  %s422_s2 = inlined_call_operand.vmem [shape: f32[8,128], index: 2, kind: output, shape index: {}]  }
   0x1   :  { %8 = vsyncpa [#allocation5], 0  ;;  %s365_s9 = smov [#allocation2]   ;;  %s366_s11 = smov [#allocation4]  }
   0x2   :  { %s15_s10 = sshll.u32 %s365_s9, 4  ;;  %s24_s12 = sshll.u32 %s366_s11, 4  ;;  %s16_s10 = int_to_ptr.vmem [resolvable:$true] %s15_s10  ;;  %s25_s12 = int_to_ptr.vmem [resolvable:$true] %s24_s12 }
   0x3   :  { %s329_s13 = scalar_lea.vmem %s16_s10, 128  ;;  %p334_p1 = scmp.lt.s32.totalorder %s16_s10, %s16_s10 }
   0x4   :  { %p330_p0 = scmp.ne.s32.totalorder %s16_s10, %s329_s13  ;;  %p335_p2 = scmp.lt.s32.totalorder %s329_s13, %s329_s13 }
   0x6   :  { %p336_p3 = por %p335_p2, %p334_p1 }
   0x8   :  { %p337_p4 = pnand %p336_p3, %p330_p0 }
   0xa   :  { %340 = shalt.err (!%p337_p4)
}
   0xb   :  { %18 = dma.hbm_to_vmem [thread:$0]  %s420_s0, 128, %s16_s10, [#allocation3]  }
   0xc   :  { %s349_s16 = scalar_lea.vmem %s25_s12, 2688  ;;  %p354_p6 = scmp.lt.s32.totalorder %s25_s12, %s25_s12 }
   0xd   :  { %p350_p5 = scmp.ne.s32.totalorder %s25_s12, %s349_s16  ;;  %p355_p7 = scmp.lt.s32.totalorder %s349_s16, %s349_s16 }
   0xf   :  { %p356_p8 = por %p355_p7, %p354_p6 }
  0x11   :  { %p357_p9 = pnand %p356_p8, %p350_p5 }
  0x13   :  { %360 = shalt.err (!%p357_p9)
}
  0x14   :  { %s367_s17 = smov 128   ;;  %s368_s18 = smov 8  }
  0x15   :  { %30 = dma.hbm_to_vmem [thread:$0]  %s421_s1, 2688, %s25_s12, [#allocation5], %s367_s17, %s367_s17, %s368_s18  }
  0x16   :  { %361 = dma.done.wait [#allocation3], 128  }
  0x17   :  { %362 = vsyncadd [#allocation3], 4294967168 }
  0x18   :  { %363 = dma.done.wait [#allocation5], 2688  }
  0x19   :  { %364 = vsyncadd [#allocation5], 4294964608  ;;  %v369_v0 = vmov 0.0   ;;  %vm370_vm0 = vmmov 0   ;;  %vm38_vm1 = vcmask 261120   ;;  %v66_v1 = vld [vmem:[#allocation4 + $0x20] sm:$0xff] }
  0x1a   :  { %267 = vmatprep.subr.mxu0 %v369_v0  ;;  %275 = vmatprep.mubr.msk.f32.mxu0 %vm370_vm0, %v369_v0  ;;  %v65_v2 = vld [vmem:[#allocation4 + $0x18] sm:$0xff]  ;;  %v82_v4 = vld [vmem:[#allocation4 + $0xa0] sm:$0xff]  ;;  %v64_v5 = vld [vmem:[#allocation4 + $0x10] sm:$0xff] }
  0x1b   :  { %278 = vmatprep.subr.mxu1 %v369_v0  ;;  %310 = vmatprep.mubr.msk.f32.mxu1 %vm370_vm0, %v369_v0  ;;  %v37_v3 = vld [vmem:[#allocation2] sm:$0xff]  ;;  %v80_v9 = vld [vmem:[#allocation4 + $0x90] sm:$0xff]  ;;  %v63_v10 = vld [vmem:[#allocation4 + $0x8] sm:$0xff] }
  0x1c   :  { %268 = vmatpush3.msra.mxu0 %v66_v1  ;;  %v39_v6 = vsel %vm38_vm1, %v37_v3, 0.0  ;;  %279 = vmatpush3.msra.mxu1 %v82_v4  ;;  %v81_v7 = vld [vmem:[#allocation4 + $0x98] sm:$0xff]  ;;  %v79_v12 = vld [vmem:[#allocation4 + $0x88] sm:$0xff]  ;;  %v78_v14 = vld [vmem:[#allocation4 + $0x80] sm:$0xff] }
  0x1d   :  { %269 = vmatprep.subr.mxu0 %v369_v0  ;;  %v40_v8 = vrot.slane %v39_v6, 4  ;;  %280 = vmatprep.subr.mxu1 %v369_v0  ;;  %v77_v16 = vld [vmem:[#allocation4 + $0x78] sm:$0xff]  ;;  %v76_v18 = vld [vmem:[#allocation4 + $0x70] sm:$0xff]  ;;  %v75_v20 = vld [vmem:[#allocation4 + $0x68] sm:$0xff] }
  0x1e   :  { %270 = vmatpush3.msra.mxu0 %v65_v2  ;;  %281 = vmatpush3.msra.mxu1 %v81_v7  ;;  %v74_v22 = vld [vmem:[#allocation4 + $0x60] sm:$0xff]  ;;  %v73_v24 = vld [vmem:[#allocation4 + $0x58] sm:$0xff]  ;;  %v72_v26 = vld [vmem:[#allocation4 + $0x50] sm:$0xff] }
  0x1f   :  { %271 = vmatprep.subr.mxu0 %v369_v0  ;;  %v41_v11 = vadd.f32 %v40_v8, %v39_v6  ;;  %282 = vmatprep.subr.mxu1 %v369_v0  ;;  %v71_v28 = vld [vmem:[#allocation4 + $0x48] sm:$0xff]  ;;  %v70_v30 = vld [vmem:[#allocation4 + $0x40] sm:$0xff]  ;;  %v69_v40 = vld [vmem:[#allocation4 + $0x38] sm:$0xff] }
  0x20   :  { %272 = vmatpush3.msra.mxu0 %v64_v5  ;;  %283 = vmatpush3.msra.mxu1 %v80_v9  ;;  %v68_v41 = vld [vmem:[#allocation4 + $0x30] sm:$0xff]  ;;  %v67_v42 = vld [vmem:[#allocation4 + $0x28] sm:$0xff]  ;;  %v242_v43 = vld [vmem:[#allocation4] ss:$0 sm:$0xff] }
  0x21   :  { %273 = vmatprep.subr.mxu0 %v369_v0  ;;  %v42_v13 = vrot.slane %v41_v11, 2  ;;  %284 = vmatprep.subr.mxu1 %v369_v0  ;;  %v244_v48 = vld [vmem:[#allocation4 + $0x1] ss:$0 sm:$0xff] }
  0x22   :  { %274 = vmatpush3.msra.mxu0 %v63_v10  ;;  %285 = vmatpush3.msra.mxu1 %v79_v12 }
  0x23   :  { %v43_v15 = vadd.f32 %v42_v13, %v41_v11  ;;  %286 = vmatprep.subr.mxu1 %v369_v0 }
  0x24   :  { %287 = vmatpush3.msra.mxu1 %v78_v14 }
  0x25   :  { %v44_v17 = vrot.slane %v43_v15, 1  ;;  %288 = vmatprep.subr.mxu1 %v369_v0 }
  0x26   :  { %289 = vmatpush3.msra.mxu1 %v77_v16 }
  0x27   :  { %v45_v19 = vadd.f32 %v44_v17, %v43_v15  ;;  %290 = vmatprep.subr.mxu1 %v369_v0 }
  0x28   :  { %291 = vmatpush3.msra.mxu1 %v76_v18 }
  0x29   :  { %v47_v21 = vmul.f32 0.125, %v45_v19  ;;  %292 = vmatprep.subr.mxu1 %v369_v0 }
  0x2a   :  { %293 = vmatpush3.msra.mxu1 %v75_v20 }
  0x2b   :  { %v48_v23 = vsub.f32 %v37_v3, %v47_v21  ;;  %294 = vmatprep.subr.mxu1 %v369_v0 }
  0x2c   :  { %295 = vmatpush3.msra.mxu1 %v74_v22 }
  0x2d   :  { %v49_v25 = vmul.f32 %v48_v23, %v48_v23  ;;  %296 = vmatprep.subr.mxu1 %v369_v0 }
  0x2e   :  { %297 = vmatpush3.msra.mxu1 %v73_v24 }
  0x2f   :  { %v50_v27 = vsel %vm38_vm1, %v49_v25, 0.0  ;;  %298 = vmatprep.subr.mxu1 %v369_v0 }
  0x30   :  { %v51_v29 = vrot.slane %v50_v27, 4  ;;  %299 = vmatpush3.msra.mxu1 %v72_v26 }
  0x31   :  { %300 = vmatprep.subr.mxu1 %v369_v0 }
  0x32   :  { %v52_v31 = vadd.f32 %v51_v29, %v50_v27  ;;  %301 = vmatpush3.msra.mxu1 %v71_v28 }
  0x33   :  { %302 = vmatprep.subr.mxu1 %v369_v0 }
  0x34   :  { %v53_v32 = vrot.slane %v52_v31, 2  ;;  %303 = vmatpush3.msra.mxu1 %v70_v30 }
  0x35   :  { %304 = vmatprep.subr.mxu1 %v369_v0 }
  0x36   :  { %v54_v33 = vadd.f32 %v53_v32, %v52_v31  ;;  %305 = vmatpush3.msra.mxu1 %v69_v40 }
  0x37   :  { %306 = vmatprep.subr.mxu1 %v369_v0 }
  0x38   :  { %v55_v34 = vrot.slane %v54_v33, 1  ;;  %307 = vmatpush3.msra.mxu1 %v68_v41 }
  0x39   :  { %308 = vmatprep.subr.mxu1 %v369_v0 }
  0x3a   :  { %v56_v35 = vadd.f32 %v55_v34, %v54_v33  ;;  %309 = vmatpush3.msra.mxu1 %v67_v42 }
  0x3c   :  { %v57_v36 = vmul.f32 0.125, %v56_v35 }
  0x3e   :  { %v58_v37 = vadd.f32 1e-05, %v57_v36 }
  0x40   :  { %319 = vrsqrt.f32 %v58_v37 }
  0x4d   :  { %v320_v38 = vpop.eup %319 }
  0x4e   :  { %v60_v39 = vmul.f32 %v320_v38, %v48_v23 }
  0x50   :  { %276 = vmatmul.mubr.msk.f32.vlgmr.msra.gmra.mxu0 %vm38_vm1, %v60_v39 }
 0x110   :  { %v156_v44 = vpop.f32.mrf.mxu0 }
 0x111   :  { %v157_v45 = vadd.f32 %v242_v43, %v156_v44 }
 0x112   :  { %v277_v46 = vpop.f32.mrf.mxu0 }
 0x113   :  { %v160_v47 = vmax.f32 %v157_v45, 0.0 }
 0x115   :  { %311 = vmatmul.mubr.f32.vlgmr.msra.gmra.mxu1 %v160_v47 }
 0x1d5   :  { %v231_v49 = vpop.f32.mrf.mxu1 }
 0x1d6   :  { %v232_v50 = vadd.f32 %v244_v48, %v231_v49 }
 0x1d7   :  { %v312_v51 = vpop.f32.mrf.mxu1 }
 0x1d8   :  { %235 = vst [vmem:[%s422_s2] sm:$0xff] %v232_v50 }
 0x1d9   :  { %240 = vsyncpa [#allocation3], 1 }
 0x1da   :  { %241 = vsyncpa [#allocation5], 1 }

</bundles_post_ra>
